<compile_context>
chip_gen: v7x
topology: tpu7x:2x2x1
jax: 0.10.0
libtpu: 0.0.40
codegen_flags: <defaults>
</compile_context>

<pallas_src>
import functools

import jax
import jax.numpy as jnp
from jax.experimental import pallas as pl
from jax.experimental.pallas import tpu as pltpu

_LANE = 128
_SUBLANE = 8
_EPS = 1e-6
# ~2 MiB of f32 per pipelined buffer: already on the 85%+ HBM-roofline plateau
# on every generation while leaving ample VMEM headroom.
_TARGET_BLOCK_BYTES = 2 * 1024 * 1024
# Explicit scoped-VMEM request; safe on v5e/v6e/v7x.
_VMEM_LIMIT_BYTES = 32 * 1024 * 1024
# Keep at least this many grid steps on big inputs (v7x megacore + pipelining).
_MIN_GRID_STEPS = 8


def _pick_block_rows(total_rows, row_bytes_f32):
    """Rows per block: multiple of 8, ~2 MiB of f32 work, >= _MIN_GRID_STEPS
    grid steps on large inputs.  Falls back to full extent for tiny inputs."""
    tb = _TARGET_BLOCK_BYTES // max(1, row_bytes_f32)
    tb = (tb // _SUBLANE) * _SUBLANE
    if total_rows >= _MIN_GRID_STEPS * _SUBLANE:
        cap = (pl.cdiv(total_rows, _MIN_GRID_STEPS) // _SUBLANE) * _SUBLANE
        tb = min(tb, max(_SUBLANE, cap))
    tb = max(_SUBLANE, tb)
    if tb >= total_rows:
        return total_rows          # full extent: always a legal block shape
    return tb                      # multiple of 8; edge block is masked


# --------------------------------------------------------------------------
# Flattened path: block (TB, H*W), lane-dense.  H must be a power of two.
# --------------------------------------------------------------------------
def _norm_flat_kernel(x_ref, o_ref, *, h, w):
    # Lane index g = h_idx * W + w_idx.  A cyclic lane-rotation tree with
    # strides W*H/2, W*H/4, ..., W leaves *every* lane holding the sum over
    # its h-group (so no explicit broadcast is needed).  Rolls ride the XLU
    # slot; the kernel stays DMA-bound.
    x = x_ref[...].astype(jnp.float32)

    def tree_group_sum(v):
        s = v
        step = (h // 2) * w
        while step >= w:
            s = s + pltpu.roll(s, shift=step, axis=1)
            step //= 2
        return s

    mean = tree_group_sum(x) * jnp.float32(1.0 / h)          # exact for pow2 h
    diff = x - mean
    # torch.std default is unbiased (ddof = 1); h == 1 -> 0/0 -> NaN like torch.
    var = tree_group_sum(diff * diff) / jnp.float32(h - 1)
    inv = 1.0 / (jnp.sqrt(var) + jnp.float32(_EPS))
    o_ref[...] = (diff * inv).astype(o_ref.dtype)


def _norm_flat_path(x):
    n, c, h, w = x.shape
    nc, g = n * c, h * w
    x2 = x.reshape(nc, g)                      # free, contiguous: no HBM transpose
    tb = _pick_block_rows(nc, g * 4)

    out2 = pl.pallas_call(
        functools.partial(_norm_flat_kernel, h=h, w=w),
        out_shape=jax.ShapeDtypeStruct((nc, g), x.dtype),
        grid_spec=pltpu.PrefetchScalarGridSpec(
            num_scalar_prefetch=0,
            grid=(pl.cdiv(nc, tb),),
            in_specs=[pl.BlockSpec((tb, g), lambda i: (i, 0))],
            out_specs=pl.BlockSpec((tb, g), lambda i: (i, 0)),
        ),
        compiler_params=pltpu.CompilerParams(
            dimension_semantics=("parallel",),
            vmem_limit_bytes=_VMEM_LIMIT_BYTES,
        ),
    )(x2)
    return out2.reshape(n, c, h, w)


# --------------------------------------------------------------------------
# NCHW path: block (TB, H, W), reduce over axis 1 (sublanes).  Lane-dense when
# W % 128 == 0; otherwise a correct (masked-store) fallback for odd shapes.
# --------------------------------------------------------------------------
def _norm_nchw_kernel(x_ref, o_ref):
    x = x_ref[...].astype(jnp.float32)
    h = x.shape[1]
    mean = jnp.mean(x, axis=1, keepdims=True)                 # (TB, 1, W)
    diff = x - mean
    var = jnp.sum(diff * diff, axis=1, keepdims=True) / jnp.float32(h - 1)
    inv = 1.0 / (jnp.sqrt(var) + jnp.float32(_EPS))
    o_ref[...] = (diff * inv).astype(o_ref.dtype)


def _norm_nchw_path(x):
    n, c, h, w = x.shape
    nc = n * c
    x3 = x.reshape(nc, h, w)                   # free, contiguous
    tb = _pick_block_rows(nc, h * w * 4)

    out3 = pl.pallas_call(
        _norm_nchw_kernel,
        out_shape=jax.ShapeDtypeStruct((nc, h, w), x.dtype),
        grid_spec=pltpu.PrefetchScalarGridSpec(
            num_scalar_prefetch=0,
            grid=(pl.cdiv(nc, tb),),
            in_specs=[pl.BlockSpec((tb, h, w), lambda i: (i, 0, 0))],
            out_specs=pl.BlockSpec((tb, h, w), lambda i: (i, 0, 0)),
        ),
        compiler_params=pltpu.CompilerParams(
            dimension_semantics=("parallel",),
            vmem_limit_bytes=_VMEM_LIMIT_BYTES,
        ),
    )(x3)
    return out3.reshape(n, c, h, w)


# --------------------------------------------------------------------------
# Dispatch
# --------------------------------------------------------------------------
def pallas_norm(x):
    """x: (N, C, H, W). Normalize along axis 2 (keepdim baked in), eps on std."""
    assert x.ndim == 4, "pallas_norm expects an NCHW tensor (axis=2 reduction)"
    _, _, h, w = x.shape
    h_pow2 = h >= 1 and (h & (h - 1)) == 0
    lane_dense_nchw = (w % _LANE == 0) and (h >= _SUBLANE)
    if (h * w) % _LANE == 0 and h_pow2 and not lane_dense_nchw:
        return _norm_flat_path(x)       # e.g. W=16, H=16: single lane-dense pass
    # Lane-dense NCHW when W % 128 == 0 and H >= 8; otherwise a correct
    # fallback (full (H, W) blocks, possibly masked partial stores).
    return _norm_nchw_path(x)


def _reference_norm(x, axis=2):
    mean = jnp.mean(x, axis=axis, keepdims=True)
    std = jnp.std(x, axis=axis, keepdims=True, ddof=1)   # unbiased, like torch
    return (x - mean) / (std + _EPS)


if __name__ == "__main__":
    key = jax.random.PRNGKey(0)

    # Case 1: module-default shape (W=16 < 128) -> flattened roll-tree path.
    x1 = jax.random.normal(key, (2, 4, 16, 16), dtype=jnp.float32)
    out1 = pallas_norm(x1)
    jax.block_until_ready(out1)
    ref1 = _reference_norm(x1, axis=2)
    assert out1.shape == x1.shape
    assert jnp.allclose(out1, ref1, atol=1e-4, rtol=1e-4)

    # Case 2: W already a multiple of 128, H >= 8 -> lane-dense NCHW path.
    x2 = jax.random.normal(jax.random.PRNGKey(1), (2, 2, 8, 128),
                           dtype=jnp.float32)
    out2 = pallas_norm(x2)
    jax.block_until_ready(out2)
    ref2 = _reference_norm(x2, axis=2)
    assert out2.shape == x2.shape
    assert jnp.allclose(out2, ref2, atol=1e-4, rtol=1e-4)

    print("KERNEL_OK")
</pallas_src>

<mosaic_0001>
module attributes {stable_mosaic.version = 11 : i64} {
  func.func @_norm_flat_kernel(%arg0: i32, %arg1: memref<8x256xf32, #tpu.memory_space<vmem>>, %arg2: memref<8x256xf32, #tpu.memory_space<vmem>>) attributes {dimension_semantics = [#tpu.dimension_semantics<parallel>], iteration_bounds = array<i64: 1>, scalar_prefetch = 0 : i64, scratch_operands = 0 : i64, tpu.core_type = #tpu.core_type<tc>, window_params = [{transform_indices = @transform_0, window_bounds = array<i64: 8, 256>}, {transform_indices = @transform_1, window_bounds = array<i64: 8, 256>}]} {
    %c0 = arith.constant 0 : index
    %c0_0 = arith.constant 0 : index
    %0 = vector.load %arg1[%c0, %c0_0] : memref<8x256xf32, #tpu.memory_space<vmem>>, vector<8x256xf32>
    %c128_i32 = arith.constant 128 : i32
    %1 = tpu.dynamic_rotate %0 by %c128_i32 dim 1 : vector<8x256xf32>, i32 -> vector<8x256xf32>
    %2 = arith.addf %0, %1 : vector<8x256xf32>
    %c64_i32 = arith.constant 64 : i32
    %3 = tpu.dynamic_rotate %2 by %c64_i32 dim 1 : vector<8x256xf32>, i32 -> vector<8x256xf32>
    %4 = arith.addf %2, %3 : vector<8x256xf32>
    %c32_i32 = arith.constant 32 : i32
    %5 = tpu.dynamic_rotate %4 by %c32_i32 dim 1 : vector<8x256xf32>, i32 -> vector<8x256xf32>
    %6 = arith.addf %4, %5 : vector<8x256xf32>
    %c16_i32 = arith.constant 16 : i32
    %7 = tpu.dynamic_rotate %6 by %c16_i32 dim 1 : vector<8x256xf32>, i32 -> vector<8x256xf32>
    %8 = arith.addf %6, %7 : vector<8x256xf32>
    %cst = arith.constant 6.250000e-02 : f32
    %9 = vector.broadcast %cst : f32 to vector<8x256xf32>
    %10 = arith.mulf %8, %9 : vector<8x256xf32>
    %11 = arith.subf %0, %10 : vector<8x256xf32>
    %12 = arith.mulf %11, %11 : vector<8x256xf32>
    %c128_i32_1 = arith.constant 128 : i32
    %13 = tpu.dynamic_rotate %12 by %c128_i32_1 dim 1 : vector<8x256xf32>, i32 -> vector<8x256xf32>
    %14 = arith.addf %12, %13 : vector<8x256xf32>
    %c64_i32_2 = arith.constant 64 : i32
    %15 = tpu.dynamic_rotate %14 by %c64_i32_2 dim 1 : vector<8x256xf32>, i32 -> vector<8x256xf32>
    %16 = arith.addf %14, %15 : vector<8x256xf32>
    %c32_i32_3 = arith.constant 32 : i32
    %17 = tpu.dynamic_rotate %16 by %c32_i32_3 dim 1 : vector<8x256xf32>, i32 -> vector<8x256xf32>
    %18 = arith.addf %16, %17 : vector<8x256xf32>
    %c16_i32_4 = arith.constant 16 : i32
    %19 = tpu.dynamic_rotate %18 by %c16_i32_4 dim 1 : vector<8x256xf32>, i32 -> vector<8x256xf32>
    %20 = arith.addf %18, %19 : vector<8x256xf32>
    %cst_5 = arith.constant 1.500000e+01 : f32
    %21 = vector.broadcast %cst_5 : f32 to vector<8x256xf32>
    %22 = arith.divf %20, %21 : vector<8x256xf32>
    %23 = math.sqrt %22 : vector<8x256xf32>
    %cst_6 = arith.constant 9.99999997E-7 : f32
    %24 = vector.broadcast %cst_6 : f32 to vector<8x256xf32>
    %25 = arith.addf %23, %24 : vector<8x256xf32>
    %cst_7 = arith.constant 1.000000e+00 : f32
    %26 = vector.broadcast %cst_7 : f32 to vector<8x256xf32>
    %27 = arith.divf %26, %25 : vector<8x256xf32>
    %28 = arith.mulf %11, %27 : vector<8x256xf32>
    %c0_8 = arith.constant 0 : index
    %c0_9 = arith.constant 0 : index
    %29 = vector.load %arg2[%c0_8, %c0_9] : memref<8x256xf32, #tpu.memory_space<vmem>>, vector<8x256xf32>
    tpu.vector_store %arg2[%c0_8, %c0_9], %28 {strides = array<i32>} : memref<8x256xf32, #tpu.memory_space<vmem>>, vector<8x256xf32>,
    return
  }
  func.func @transform_0(%arg0: i32) -> (i32, i32) {
    %c0_i32 = arith.constant 0 : i32
    %c0_i32_0 = arith.constant 0 : i32
    return %arg0, %c0_i32 : i32, i32
  }
  func.func @transform_1(%arg0: i32) -> (i32, i32) {
    %c0_i32 = arith.constant 0 : i32
    %c0_i32_0 = arith.constant 0 : i32
    return %arg0, %c0_i32 : i32, i32
  }
}

</mosaic_0001>

<bundles_post_ra>
// kernel: tpu_custom_call.1
= control target key start
LH: loop header
LB: loop body
LE: loop exit
PB: predicated region body
PF: predicated region fallthrough
CT: control target
= control target key end

     0   :  { %6 = vsyncpa [#allocation3], 0  ;;  %s177_s0 = inlined_call_operand.hbm [shape: f32[8,256], index: 0, kind: input, shape index: {}]   ;;  %s178_s1 = inlined_call_operand.hbm [shape: f32[8,256], index: 1, kind: output, shape index: {}]  }
   0x1   :  { %7 = vsyncpa [#allocation4], 0  ;;  %s138_s6 = smov [#allocation2]   ;;  %s90_s10 = scalar_lea.hbm %s177_s0, 256 }
   0x2   :  { %s14_s7 = sshll.u32 %s138_s6, 4  ;;  %p91_p0 = scmp.ne.s32.totalorder %s177_s0, %s90_s10  ;;  %s15_s7 = int_to_ptr.vmem [resolvable:$true] %s14_s7 }
   0x3   :  { %p94_p1 = scmp.lt.u32.totalorder %s90_s10, %s177_s0 }
   0x5   :  { %p96_p2 = pnand %p94_p1, %p91_p0 }
   0x7   :  { %99 = shalt.err (!%p96_p2)
}
   0x8   :  { %s100_s15 = scalar_lea.vmem %s15_s7, 256  ;;  %p105_p4 = scmp.lt.s32.totalorder %s15_s7, %s15_s7 }
   0x9   :  { %p101_p3 = scmp.ne.s32.totalorder %s15_s7, %s100_s15  ;;  %p106_p5 = scmp.lt.s32.totalorder %s100_s15, %s100_s15 }
   0xb   :  { %p107_p6 = por %p106_p5, %p105_p4 }
   0xd   :  { %p108_p7 = pnand %p107_p6, %p101_p3 }
   0xf   :  { %111 = shalt.err (!%p108_p7)
}
  0x10   :  { %17 = dma.hbm_to_vmem [thread:$0]  %s177_s0, 256, %s15_s7, [#allocation3]  }
  0x11   :  { %134 = dma.done.wait [#allocation3], 256  }
  0x12   :  { %135 = vsyncadd [#allocation3], 4294967040  ;;  %v21_v0 = vld [vmem:[#allocation2] sm:$0xff]  ;;  %v22_v1 = vld [vmem:[#allocation2 + $0x8] sm:$0xff]  ;;  %s139_s18 = smov 64   ;;  %s140_s19 = smov 32  }
  0x13   :  { %v23_v2 = vadd.f32 %v22_v1, %v21_v0  ;;  %s141_s20 = smov 16   ;;  %s142_s0 = smov [#allocation5]  }
  0x14   :  { %s72_s21 = sshll.u32 %s142_s0, 4  ;;  %s73_s21 = int_to_ptr.vmem [resolvable:$true] %s72_s21 }
  0x15   :  { %24 = vrot.lane.b32.xlu0 %v23_v2, %s139_s18  ;;  %s112_s22 = scalar_lea.vmem %s73_s21, 256  ;;  %p117_p9 = scmp.lt.s32.totalorder %s73_s21, %s73_s21 }
  0x16   :  { %p113_p8 = scmp.ne.s32.totalorder %s73_s21, %s112_s22  ;;  %p118_p10 = scmp.lt.s32.totalorder %s112_s22, %s112_s22 }
  0x18   :  { %p119_p11 = por %p118_p10, %p117_p9 }
  0x1a   :  { %p120_p12 = pnand %p119_p11, %p113_p8 }
  0x87   :  { %v25_v3 = vpop.permute.xlu0 %24 }
  0x88   :  { %v28_v4 = vadd.f32 %v25_v3, %v23_v2 }
  0x8a   :  { %29 = vrot.lane.b32.xlu0 %v28_v4, %s140_s19 }
  0xfc   :  { %v30_v5 = vpop.permute.xlu0 %29 }
  0xfd   :  { %v31_v6 = vadd.f32 %v30_v5, %v28_v4 }
  0xff   :  { %32 = vrot.lane.b32.xlu1 %v31_v6, %s141_s20 }
 0x171   :  { %v33_v7 = vpop.permute.xlu1 %32 }
 0x172   :  { %v34_v8 = vadd.f32 %v33_v7, %v31_v6 }
 0x174   :  { %v35_v9 = vmul.f32 0.0625, %v34_v8 }
 0x176   :  { %v36_v10 = vsub.f32 %v21_v0, %v35_v9  ;;  %v37_v11 = vsub.f32 %v22_v1, %v35_v9 }
 0x178   :  { %v38_v12 = vmul.f32 %v36_v10, %v36_v10  ;;  %v39_v13 = vmul.f32 %v37_v11, %v37_v11 }
 0x17a   :  { %v40_v14 = vadd.f32 %v39_v13, %v38_v12 }
 0x17c   :  { %41 = vrot.lane.b32.xlu1 %v40_v14, %s139_s18 }
 0x1ee   :  { %v42_v15 = vpop.permute.xlu1 %41 }
 0x1ef   :  { %v43_v16 = vadd.f32 %v42_v15, %v40_v14 }
 0x1f1   :  { %44 = vrot.lane.b32.xlu0 %v43_v16, %s140_s19 }
 0x263   :  { %v45_v17 = vpop.permute.xlu0 %44 }
 0x264   :  { %v46_v18 = vadd.f32 %v45_v17, %v43_v16 }
 0x266   :  { %47 = vrot.lane.b32.xlu1 %v46_v18, %s141_s20 }
 0x2d8   :  { %v48_v19 = vpop.permute.xlu1 %47 }
 0x2d9   :  { %v49_v20 = vadd.f32 %v48_v19, %v46_v18 }
 0x2db   :  { %v51_v21 = vmul.f32 0.06666667, %v49_v20 }
 0x2dd   :  { %86 = vrsqrt.f32 %v51_v21  ;;  %vm54_vm0 = vcmp.eq.f32.partialorder %v51_v21, inf  ;;  %v57_v24 = vand.u32 2147483648, %v51_v21  ;;  %vm56_vm1 = vcmp.eq.f32.partialorder %v51_v21, 0.0 }
 0x2e7   :  { %v87_v22 = vpop.eup %86 }
 0x2e8   :  { %v53_v23 = vmul.f32 %v87_v22, %v51_v21 }
 0x2ea   :  { %v55_v25 = vsel %vm54_vm0, %v51_v21, %v53_v23 }
 0x2eb   :  { %v58_v26 = vsel %vm56_vm1, %v57_v24, %v55_v25 }
 0x2ec   :  { %v59_v27 = vadd.f32 1e-06, %v58_v26 }
 0x2ee   :  { %88 = vrcp.f32 %v59_v27 }
 0x2f8   :  { %v89_v28 = vpop.eup %88 }
 0x2f9   :  { %v62_v29 = vmul.f32 %v89_v28, %v36_v10  ;;  %v63_v30 = vmul.f32 %v89_v28, %v37_v11 }
 0x2fb   :  { %64 = vst [vmem:[#allocation5] sm:$0xff] %v62_v29  ;;  %65 = vst [vmem:[#allocation5 + $0x8] sm:$0xff] %v63_v30 }
 0x2fc   :  { %123 = shalt.err (!%p120_p12)
}
 0x2fd   :  { %s124_s25 = scalar_lea.hbm %s178_s1, 256 }
 0x2fe   :  { %p125_p13 = scmp.ne.s32.totalorder %s178_s1, %s124_s25  ;;  %p128_p0 = scmp.lt.u32.totalorder %s124_s25, %s178_s1 }
 0x300   :  { %p130_p1 = pnand %p128_p0, %p125_p13 }
 0x302   :  { %133 = shalt.err (!%p130_p1)
}
 0x303   :  { %75 = dma.vmem_to_hbm [thread:$0]  %s73_s21, 256, %s178_s1, [#allocation4]  }
 0x304   :  { %136 = dma.done.wait [#allocation4], 256  }
 0x305   :  { %137 = vsyncadd [#allocation4], 4294967040 }
 0x306   :  { %79 = vsyncpa [#allocation3], 1 }
 0x307   :  { %80 = vsyncpa [#allocation4], 1 }

</bundles_post_ra>
